<compile_context>
chip_gen: v7x
topology: tpu7x:2x2x1
jax: 0.10.0
libtpu: 0.0.40
codegen_flags: <defaults>
</compile_context>

<pallas_src>
import functools

import jax
import jax.numpy as jnp
from jax.experimental import pallas as pl
from jax.experimental.pallas import tpu as pltpu

_LANE = 128          # vreg lane width; last dim of the MSE slab
_SUBLANE = 8         # vreg sublane count; accumulator rows
_MAX_TILE_ROWS = 4096  # (4096,128) f32 tile = 2 MiB -> 2 inputs x 2 bufs = 8 MiB


def _round_up(x, m):
    return ((x + m - 1) // m) * m


def _elbo_kernel(scal_ref, xb_ref, xhat_ref, z_ref, mean_ref, std_ref,
                 out_ref, acc_ref, *, tile_r, valid_rows, ragged):
    # Grid position read ONCE at the top level: pl.program_id inside a pl.when
    # body is what broke lowering previously.
    k = pl.program_id(0)
    nk = pl.num_programs(0)

    @pl.when(k == 0)
    def _():
        acc_ref[...] = jnp.zeros_like(acc_ref)

    # Steady state: native-dtype load, in-kernel upcast, pure VPU accumulate.
    xb = xb_ref[...].astype(jnp.float32)
    xh = xhat_ref[...].astype(jnp.float32)
    d = xb - xh
    sq = d * d

    if ragged:
        # Only traced when rows % tile_r != 0: the OOB rows of the last block
        # have unspecified contents, so mask them out of the accumulation.
        rid = k * tile_r + jax.lax.broadcasted_iota(jnp.int32, (tile_r, _LANE), 0)
        sq = jnp.where(rid < valid_rows, sq, 0.0)

    # Fold the (tile_r,128) tile into one (8,128) accumulator vreg: vreg-wise
    # VALU adds only; the single cross-lane/sublane reduce is deferred to the end.
    acc_ref[...] += jnp.sum(sq.reshape(-1, _SUBLANE, _LANE), axis=0)

    @pl.when(k == nk - 1)
    def _():
        beta = scal_ref[0]
        inv_b = scal_ref[1]
        mse_part = jnp.sum(acc_ref[...])

        # KL epilogue (one-shot, tiny B x D). The 0.5*log(2*pi) terms of the two
        # Normal log-probs cancel exactly, so they are dropped.
        z = z_ref[...].astype(jnp.float32)
        mu = mean_ref[...].astype(jnp.float32)
        sd = std_ref[...].astype(jnp.float32)
        kl_elem = 0.5 * z * z - (z - mu) ** 2 / (2.0 * sd * sd) - jnp.log(sd)

        total = (mse_part + beta * jnp.sum(kl_elem)) * inv_b
        out_ref[...] = jnp.broadcast_to(total, out_ref.shape)


def elbo_loss(xb, z, logvar, mean, std, xhat, beta=0.1):
    """Pallas TPU forward of ELBOLoss: sum((xb-xhat)^2)/B + beta*mean_b(sum_d KL)."""
    del logvar  # unused, as in the PyTorch module
    B = xb.shape[0]
    total = xb.size

    # Lane/sublane-dense slab for the MSE stream: (rows, 128), rows % 8 == 0.
    rows = _round_up(pl.cdiv(total, _LANE), _SUBLANE)
    tile_r = min(rows, _MAX_TILE_ROWS)          # _MAX_TILE_ROWS is 8-aligned
    nk = pl.cdiv(rows, tile_r)
    ragged = (rows % tile_r) != 0               # ragged last tile -> in-kernel mask
    pad = rows * _LANE - total                  # 0 when total % 1024 == 0 (common case)

    xb_flat = xb.reshape(-1)
    xh_flat = xhat.reshape(-1)
    if pad:
        # Only when total isn't 1024-aligned (the (rows,128) reshape needs it);
        # pad < 1024 elements, never a full tile — the tile-level ragged edge is
        # masked inside the kernel instead.
        xb_flat = jnp.pad(xb_flat, (0, pad))
        xh_flat = jnp.pad(xh_flat, (0, pad))
    xb2 = xb_flat.reshape(rows, _LANE)   # native dtype; upcast happens in-kernel
    xh2 = xh_flat.reshape(rows, _LANE)

    # beta and 1/B as SMEM scalars -> no retrace for different beta / batch size.
    scalars = jnp.array([beta, 1.0 / B], dtype=jnp.float32)

    kernel = functools.partial(
        _elbo_kernel, tile_r=tile_r, valid_rows=rows, ragged=ragged)

    mse_spec = pl.BlockSpec((tile_r, _LANE), lambda k: (k, 0))
    # z/mean/std are small (B, D) and fetched once (constant block index).
    # NOTE: for very large B*D these should be tiled over B instead.
    kl_spec = pl.BlockSpec(z.shape, lambda k: (0, 0))
    smem_spec = pl.BlockSpec(memory_space=pltpu.MemorySpace.SMEM)

    out = pl.pallas_call(
        kernel,
        out_shape=jax.ShapeDtypeStruct((1, 1), jnp.float32),
        grid=(nk,),
        in_specs=[smem_spec, mse_spec, mse_spec, kl_spec, kl_spec, kl_spec],
        out_specs=pl.BlockSpec((1, 1), lambda k: (0, 0)),
        scratch_shapes=[pltpu.VMEM((_SUBLANE, _LANE), jnp.float32)],
        compiler_params=pltpu.CompilerParams(
            dimension_semantics=("arbitrary",)),
    )(scalars, xb2, xh2, z, mean, std)

    # Match the PyTorch return shape (1,).
    return out.reshape(1)


def _elbo_ref(xb, z, logvar, mean, std, xhat, beta=0.1):
    del logvar
    B = xb.shape[0]
    half_log_2pi = 0.5 * jnp.log(2.0 * jnp.pi)
    log_probz = -((z - mean) ** 2) / (2.0 * std * std) - jnp.log(std) - half_log_2pi
    log_probp = -0.5 * z * z - half_log_2pi
    kl = jnp.mean(jnp.sum(log_probz - log_probp, axis=1, keepdims=True), axis=0)
    mse = jnp.sum((xb - xhat) ** 2) / B
    return mse + beta * kl


if __name__ == "__main__":
    key = jax.random.PRNGKey(0)
    k1, k2, k3, k4, k5 = jax.random.split(key, 5)

    B, C, H, W = 2, 4, 16, 16   # image batch
    D = 32                      # latent dim

    xb = jax.random.normal(k1, (B, C, H, W), dtype=jnp.float32)
    xhat = jax.random.normal(k2, (B, C, H, W), dtype=jnp.float32)
    z = jax.random.normal(k3, (B, D), dtype=jnp.float32)
    mean = jax.random.normal(k4, (B, D), dtype=jnp.float32)
    logvar = jax.random.normal(k5, (B, D), dtype=jnp.float32) * 0.1
    std = jnp.exp(0.5 * logvar)

    out = jax.block_until_ready(elbo_loss(xb, z, logvar, mean, std, xhat, beta=0.1))
    ref = _elbo_ref(xb, z, logvar, mean, std, xhat, beta=0.1)

    assert out.shape == (1,), out.shape
    assert jnp.allclose(out, ref, rtol=5e-5, atol=1e-4), (out, ref)
    print("KERNEL_OK")
</pallas_src>

<mosaic_0001>
module attributes {stable_mosaic.version = 11 : i64} {
  func.func @_elbo_kernel(%arg0: i32, %arg1: memref<2xf32, #tpu.memory_space<smem>>, %arg2: memref<16x128xf32, #tpu.memory_space<vmem>>, %arg3: memref<16x128xf32, #tpu.memory_space<vmem>>, %arg4: memref<2x32xf32, #tpu.memory_space<vmem>>, %arg5: memref<2x32xf32, #tpu.memory_space<vmem>>, %arg6: memref<2x32xf32, #tpu.memory_space<vmem>>, %arg7: memref<1x1xf32, #tpu.memory_space<vmem>>, %arg8: memref<8x128xf32, #tpu.memory_space<vmem>>) attributes {dimension_semantics = [#tpu.dimension_semantics<arbitrary>], iteration_bounds = array<i64: 1>, scalar_prefetch = 0 : i64, scratch_operands = 1 : i64, tpu.core_type = #tpu.core_type<tc>, window_params = [{transform_indices = @transform_0, window_bounds = array<i64: 2>}, {transform_indices = @transform_1, window_bounds = array<i64: 16, 128>}, {transform_indices = @transform_2, window_bounds = array<i64: 16, 128>}, {pipeline_mode = #tpu.pipeline_mode<synchronous>, transform_indices = @transform_3, window_bounds = array<i64: 2, 32>}, {pipeline_mode = #tpu.pipeline_mode<synchronous>, transform_indices = @transform_4, window_bounds = array<i64: 2, 32>}, {pipeline_mode = #tpu.pipeline_mode<synchronous>, transform_indices = @transform_5, window_bounds = array<i64: 2, 32>}, {pipeline_mode = #tpu.pipeline_mode<synchronous>, transform_indices = @transform_6, window_bounds = array<i64: 1, 1>}]} {
    %c0_i32 = arith.constant 0 : i32
    %0 = arith.cmpi eq, %arg0, %c0_i32 : i32
    %1 = arith.extui %0 : i1 to i32
    %c0_i32_0 = arith.constant 0 : i32
    %2 = arith.cmpi ne, %1, %c0_i32_0 : i32
    scf.if %2 {
      %cst_10 = arith.constant 0.000000e+00 : f32
      %15 = vector.broadcast %cst_10 : f32 to vector<8x128xf32>
      %c0_11 = arith.constant 0 : index
      %c0_12 = arith.constant 0 : index
      %16 = vector.load %arg8[%c0_11, %c0_12] : memref<8x128xf32, #tpu.memory_space<vmem>>, vector<8x128xf32>
      tpu.vector_store %arg8[%c0_11, %c0_12], %15 {strides = array<i32>} : memref<8x128xf32, #tpu.memory_space<vmem>>, vector<8x128xf32>,
    } else {
    }
    %c0 = arith.constant 0 : index
    %c0_1 = arith.constant 0 : index
    %3 = vector.load %arg2[%c0, %c0_1] : memref<16x128xf32, #tpu.memory_space<vmem>>, vector<16x128xf32>
    %c0_2 = arith.constant 0 : index
    %c0_3 = arith.constant 0 : index
    %4 = vector.load %arg3[%c0_2, %c0_3] : memref<16x128xf32, #tpu.memory_space<vmem>>, vector<16x128xf32>
    %5 = arith.subf %3, %4 : vector<16x128xf32>
    %6 = arith.mulf %5, %5 : vector<16x128xf32>
    %c0_4 = arith.constant 0 : index
    %c0_5 = arith.constant 0 : index
    %7 = vector.load %arg8[%c0_4, %c0_5] : memref<8x128xf32, #tpu.memory_space<vmem>>, vector<8x128xf32>
    %8 = vector.shape_cast %6 : vector<16x128xf32> to vector<2x8x128xf32>
    %cst = arith.constant dense<0.000000e+00> : vector<8x128xf32>
    %9 = vector.multi_reduction <add>, %8, %cst [0] : vector<2x8x128xf32> to vector<8x128xf32>
    %10 = arith.addf %7, %9 : vector<8x128xf32>
    %c0_6 = arith.constant 0 : index
    %c0_7 = arith.constant 0 : index
    %11 = vector.load %arg8[%c0_6, %c0_7] : memref<8x128xf32, #tpu.memory_space<vmem>>, vector<8x128xf32>
    tpu.vector_store %arg8[%c0_6, %c0_7], %10 {strides = array<i32>} : memref<8x128xf32, #tpu.memory_space<vmem>>, vector<8x128xf32>,
    %c0_i32_8 = arith.constant 0 : i32
    %12 = arith.cmpi eq, %arg0, %c0_i32_8 : i32
    %13 = arith.extui %12 : i1 to i32
    %c0_i32_9 = arith.constant 0 : i32
    %14 = arith.cmpi ne, %13, %c0_i32_9 : i32
    scf.if %14 {
      %c0_10 = arith.constant 0 : index
      %15 = memref.load %arg1[%c0_10] : memref<2xf32, #tpu.memory_space<smem>>
      %c1 = arith.constant 1 : index
      %16 = memref.load %arg1[%c1] : memref<2xf32, #tpu.memory_space<smem>>
      %c0_11 = arith.constant 0 : index
      %c0_12 = arith.constant 0 : index
      %17 = vector.load %arg8[%c0_11, %c0_12] : memref<8x128xf32, #tpu.memory_space<vmem>>, vector<8x128xf32>
      %18 = vector.shape_cast %17 : vector<8x128xf32> to vector<1x8x128xf32>
      %cst_13 = arith.constant dense<0.000000e+00> : vector<1xf32>
      %19 = vector.multi_reduction <add>, %18, %cst_13 [1, 2] : vector<1x8x128xf32> to vector<1xf32>
      %20 = vector.shape_cast %19 : vector<1xf32> to vector<1x1x1xf32>
      %21 = vector.extract %20[0, 0, 0] : f32 from vector<1x1x1xf32>
      %c0_14 = arith.constant 0 : index
      %c0_15 = arith.constant 0 : index
      %22 = vector.load %arg4[%c0_14, %c0_15] : memref<2x32xf32, #tpu.memory_space<vmem>>, vector<2x32xf32>
      %c0_16 = arith.constant 0 : index
      %c0_17 = arith.constant 0 : index
      %23 = vector.load %arg5[%c0_16, %c0_17] : memref<2x32xf32, #tpu.memory_space<vmem>>, vector<2x32xf32>
      %c0_18 = arith.constant 0 : index
      %c0_19 = arith.constant 0 : index
      %24 = vector.load %arg6[%c0_18, %c0_19] : memref<2x32xf32, #tpu.memory_space<vmem>>, vector<2x32xf32>
      %cst_20 = arith.constant 5.000000e-01 : f32
      %25 = vector.broadcast %cst_20 : f32 to vector<2x32xf32>
      %26 = arith.mulf %25, %22 : vector<2x32xf32>
      %27 = arith.mulf %26, %22 : vector<2x32xf32>
      %28 = arith.subf %22, %23 : vector<2x32xf32>
      %29 = arith.mulf %28, %28 : vector<2x32xf32>
      %cst_21 = arith.constant 2.000000e+00 : f32
      %30 = vector.broadcast %cst_21 : f32 to vector<2x32xf32>
      %31 = arith.mulf %30, %24 : vector<2x32xf32>
      %32 = arith.mulf %31, %24 : vector<2x32xf32>
      %33 = arith.divf %29, %32 : vector<2x32xf32>
      %34 = arith.subf %27, %33 : vector<2x32xf32>
      %35 = math.log %24 : vector<2x32xf32>
      %36 = arith.subf %34, %35 : vector<2x32xf32>
      %37 = vector.shape_cast %36 : vector<2x32xf32> to vector<1x2x32xf32>
      %cst_22 = arith.constant dense<0.000000e+00> : vector<1xf32>
      %38 = vector.multi_reduction <add>, %37, %cst_22 [1, 2] : vector<1x2x32xf32> to vector<1xf32>
      %39 = vector.shape_cast %38 : vector<1xf32> to vector<1x1x1xf32>
      %40 = vector.extract %39[0, 0, 0] : f32 from vector<1x1x1xf32>
      %41 = arith.mulf %15, %40 : f32
      %42 = arith.addf %21, %41 : f32
      %43 = arith.mulf %42, %16 : f32
      %44 = vector.broadcast %43 : f32 to vector<1x1xf32>
      %c0_23 = arith.constant 0 : index
      %c0_24 = arith.constant 0 : index
      %45 = vector.load %arg7[%c0_23, %c0_24] : memref<1x1xf32, #tpu.memory_space<vmem>>, vector<1x1xf32>
      tpu.vector_store %arg7[%c0_23, %c0_24], %44 {strides = array<i32>} : memref<1x1xf32, #tpu.memory_space<vmem>>, vector<1x1xf32>,
    } else {
    }
    return
  }
  func.func @transform_0(%arg0: i32) -> i32 {
    %c0_i32 = arith.constant 0 : i32
    %c0_i32_0 = arith.constant 0 : i32
    return %c0_i32 : i32
  }
  func.func @transform_1(%arg0: i32) -> (i32, i32) {
    %c0_i32 = arith.constant 0 : i32
    %c0_i32_0 = arith.constant 0 : i32
    return %arg0, %c0_i32 : i32, i32
  }
  func.func @transform_2(%arg0: i32) -> (i32, i32) {
    %c0_i32 = arith.constant 0 : i32
    %c0_i32_0 = arith.constant 0 : i32
    return %arg0, %c0_i32 : i32, i32
  }
  func.func @transform_3(%arg0: i32) -> (i32, i32) {
    %c0_i32 = arith.constant 0 : i32
    %c0_i32_0 = arith.constant 0 : i32
    %c0_i32_1 = arith.constant 0 : i32
    return %c0_i32, %c0_i32_0 : i32, i32
  }
  func.func @transform_4(%arg0: i32) -> (i32, i32) {
    %c0_i32 = arith.constant 0 : i32
    %c0_i32_0 = arith.constant 0 : i32
    %c0_i32_1 = arith.constant 0 : i32
    return %c0_i32, %c0_i32_0 : i32, i32
  }
  func.func @transform_5(%arg0: i32) -> (i32, i32) {
    %c0_i32 = arith.constant 0 : i32
    %c0_i32_0 = arith.constant 0 : i32
    %c0_i32_1 = arith.constant 0 : i32
    return %c0_i32, %c0_i32_0 : i32, i32
  }
  func.func @transform_6(%arg0: i32) -> (i32, i32) {
    %c0_i32 = arith.constant 0 : i32
    %c0_i32_0 = arith.constant 0 : i32
    %c0_i32_1 = arith.constant 0 : i32
    return %c0_i32, %c0_i32_0 : i32, i32
  }
}

</mosaic_0001>

<bundles_post_ra>
// kernel: tpu_custom_call.1
= control target key start
LH: loop header
LB: loop body
LE: loop exit
PB: predicated region body
PF: predicated region fallthrough
CT: control target
= control target key end

     0   :  { %11 = vsyncpa [#allocation6], 0  ;;  %s341_s0 = inlined_call_operand.hbm [shape: f32[2], index: 0, kind: input, shape index: {}]   ;;  %s342_s1 = inlined_call_operand.hbm [shape: f32[16,128], index: 1, kind: input, shape index: {}]   ;;  %s343_s2 = inlined_call_operand.hbm [shape: f32[16,128], index: 2, kind: input, shape index: {}]   ;;  %s344_s3 = inlined_call_operand.vmem [shape: f32[2,32], index: 3, kind: input, shape index: {}]   ;;  %s345_s4 = inlined_call_operand.vmem [shape: f32[2,32], index: 4, kind: input, shape index: {}]   ;;  %s346_s5 = inlined_call_operand.vmem [shape: f32[2,32], index: 5, kind: input, shape index: {}]   ;;  %s347_s6 = inlined_call_operand.hbm [shape: f32[1,1], index: 6, kind: output, shape index: {}]  }
   0x1   :  { %12 = vsyncpa [#allocation4], 0 }
   0x2   :  { %13 = vsyncpa [#allocation9], 0 }
   0x3   :  { %14 = vsyncpa [#allocation5], 0  ;;  %s159_s23 = scalar_lea.hbm %s341_s0, 16 }
   0x4   :  { %p160_p0 = scmp.ne.s32.totalorder %s341_s0, %s159_s23  ;;  %p163_p1 = scmp.lt.u32.totalorder %s159_s23, %s341_s0 }
   0x6   :  { %p165_p2 = pnand %p163_p1, %p160_p0 }
   0x8   :  { %168 = shalt.err (!%p165_p2)
}
   0x9   :  { %s243_s28 = smov [#allocation3]   ;;  %s244_s7 = smov [#allocation7]  }
   0xa   :  { %22 = dma.hbm_to_smem %s341_s0, 16, %s243_s28, [#allocation6]  }
   0xb   :  { %s28_s8 = sshll.u32 %s244_s7, 4  ;;  %s169_s11 = scalar_lea.hbm %s342_s1, 256  ;;  %s29_s8 = int_to_ptr.vmem [resolvable:$true] %s28_s8 }
   0xc   :  { %p170_p3 = scmp.ne.s32.totalorder %s342_s1, %s169_s11  ;;  %p173_p4 = scmp.lt.u32.totalorder %s169_s11, %s342_s1 }
   0xe   :  { %p175_p5 = pnand %p173_p4, %p170_p3 }
  0x10   :  { %178 = shalt.err (!%p175_p5)
}
  0x11   :  { %s179_s16 = scalar_lea.vmem %s29_s8, 256  ;;  %p184_p7 = scmp.lt.s32.totalorder %s29_s8, %s29_s8 }
  0x12   :  { %p180_p6 = scmp.ne.s32.totalorder %s29_s8, %s179_s16  ;;  %p185_p8 = scmp.lt.s32.totalorder %s179_s16, %s179_s16 }
  0x14   :  { %p186_p9 = por %p185_p8, %p184_p7 }
  0x16   :  { %p187_p10 = pnand %p186_p9, %p180_p6 }
  0x18   :  { %190 = shalt.err (!%p187_p10)
}
  0x19   :  { %s245_s0 = smov 128   ;;  %s246_s17 = smov 8  }
  0x1a   :  { %34 = dma.hbm_to_vmem [thread:$0]  %s342_s1, 256, %s29_s8, [#allocation4], %s245_s0, %s245_s0, %s246_s17  }
  0x1b   :  { %s247_s20 = smov [#allocation8]   ;;  %s191_s24 = scalar_lea.hbm %s343_s2, 256 }
  0x1c   :  { %s40_s21 = sshll.u32 %s247_s20, 4  ;;  %p192_p11 = scmp.ne.s32.totalorder %s343_s2, %s191_s24  ;;  %s41_s21 = int_to_ptr.vmem [resolvable:$true] %s40_s21 }
  0x1d   :  { %p195_p12 = scmp.lt.u32.totalorder %s191_s24, %s343_s2 }
  0x1f   :  { %p197_p13 = pnand %p195_p12, %p192_p11 }
  0x21   :  { %200 = shalt.err (!%p197_p13)
}
  0x22   :  { %s201_s29 = scalar_lea.vmem %s41_s21, 256  ;;  %p206_p1 = scmp.lt.s32.totalorder %s41_s21, %s41_s21 }
  0x23   :  { %p202_p0 = scmp.ne.s32.totalorder %s41_s21, %s201_s29  ;;  %p207_p2 = scmp.lt.s32.totalorder %s201_s29, %s201_s29 }
  0x25   :  { %p208_p3 = por %p207_p2, %p206_p1 }
  0x27   :  { %p209_p4 = pnand %p208_p3, %p202_p0 }
  0x29   :  { %212 = shalt.err (!%p209_p4)
}
  0x2a   :  { %46 = dma.hbm_to_vmem [thread:$0]  %s343_s2, 256, %s41_s21, [#allocation9], %s245_s0, %s245_s0, %s246_s17  }
  0x2b   :  { %235 = dma.done.wait [#allocation6], 16  }
  0x2c   :  { %236 = vsyncadd [#allocation6], 4294967280 }
  0x2d   :  { %237 = dma.done.wait [#allocation4], 256  }
  0x2e   :  { %238 = vsyncadd [#allocation4], 4294967040 }
  0x2f   :  { %239 = dma.done.wait [#allocation9], 256  }
  0x30   :  { %240 = vsyncadd [#allocation9], 4294967040 }
  0x31   :  { %62 = sfence }
  0x32   :  { %v68_v0 = vld [vmem:[#allocation7] sm:$0xff]  ;;  %v69_v1 = vld [vmem:[#allocation7 + $0x8] sm:$0xff]  ;;  %v70_v2 = vld [vmem:[#allocation8] sm:$0xff]  ;;  %vm110_vm0 = vcmask 254976   ;;  %s248_s15 = smov [#allocation10]   ;;  %vm125_vm1 = vcmask 0  }
  0x33   :  { %v71_v3 = vld [vmem:[#allocation8 + $0x8] sm:$0xff]  ;;  %v72_v4 = vsub.f32 %v68_v0, %v70_v2  ;;  %v97_v6 = vld [vmem:[%s346_s5] sm:$0x3]  ;;  %s133_s16 = sshll.u32 %s248_s15, 4  ;;  %s134_s16 = int_to_ptr.vmem [resolvable:$true] %s133_s16 }
  0x34   :  { %v73_v5 = vsub.f32 %v69_v1, %v71_v3  ;;  %v102_v8 = vmul.f32 2.0, %v97_v6  ;;  %155 = vlog2.f32 %v97_v6  ;;  %v95_v12 = vld [vmem:[%s344_s3] sm:$0x3]  ;;  %s83_s3 = sld [smem:[#allocation3]]  ;;  %s213_s17 = scalar_lea.vmem %s134_s16, 16 }
  0x35   :  { %v74_v7 = vmul.f32 %v72_v4, %v72_v4  ;;  %v96_v13 = vld [vmem:[%s345_s4] sm:$0x3]  ;;  %v98_v15 = vmul.f32 0.5, %v95_v12  ;;  %s144_s4 = sld [smem:[#allocation3 + $0x1]]  ;;  %p214_p5 = scmp.ne.s32.totalorder %s134_s16, %s213_s17 }
  0x36   :  { %v75_v9 = vmul.f32 %v73_v5, %v73_v5  ;;  %v103_v10 = vmul.f32 %v102_v8, %v97_v6  ;;  %v100_v14 = vsub.f32 %v95_v12, %v96_v13  ;;  %s217_s18 = scalar_lea.vmem %s134_s16, 32  ;;  %p218_p6 = scmp.lt.s32.totalorder %s134_s16, %s134_s16 }
  0x37   :  { %v99_v18 = vmul.f32 %v98_v15, %v95_v12  ;;  %p219_p7 = scmp.lt.s32.totalorder %s217_s18, %s213_s17 }
  0x38   :  { %v77_v11 = vadd.f32 %v75_v9, %v74_v7  ;;  %157 = vrcp.f32 %v103_v10  ;;  %v101_v16 = vmul.f32 %v100_v14, %v100_v14 }
  0x39   :  { %p220_p8 = por %p219_p7, %p218_p6 }
  0x3a   :  { %86 = vadd.xlane.f32.xlu0 %v77_v11 }
  0x3b   :  { %p221_p9 = pnand %p220_p8, %p214_p5 }
  0x3e   :  { %v156_v17 = vpop.eup %155 }
  0x3f   :  { %v108_v21 = vmul.f32 0.6931472, %v156_v17 }
  0x42   :  { %v158_v19 = vpop.eup %157 }
  0x43   :  { %v105_v20 = vmul.f32 %v158_v19, %v101_v16 }
  0x45   :  { %v106_v22 = vsub.f32 %v99_v18, %v105_v20 }
  0x47   :  { %v109_v23 = vsub.f32 %v106_v22, %v108_v21 }
  0x49   :  { %v111_v24 = vsel %vm110_vm0, %v109_v23, 0.0 }
  0x4a   :  { %112 = vadd.xlane.f32.xlu0 %v111_v24 }
  0xc7   :  { %v87_v25 = vpop.xlane.xlu0 %86 }
  0xc8   :  { %v88_v26 = vrot.slane %v87_v25, 4 }
  0xca   :  { %v89_v27 = vadd.f32 %v88_v26, %v87_v25 }
  0xcc   :  { %v90_v28 = vrot.slane %v89_v27, 2 }
  0xce   :  { %v91_v29 = vadd.f32 %v90_v28, %v89_v27 }
  0xd0   :  { %v92_v30 = vrot.slane %v91_v29, 1 }
  0xd2   :  { %v93_v31 = vadd.f32 %v92_v30, %v91_v29 }
  0xd4   :  { %145 = vpush %v93_v31 }
  0xd7   :  { %v113_v32 = vpop.xlane.xlu0 %112 }
  0xd8   :  { %v114_v33 = vrot.slane %v113_v32, 4 }
  0xda   :  { %v115_v34 = vadd.f32 %v114_v33, %v113_v32 }
  0xdc   :  { %v116_v35 = vrot.slane %v115_v34, 2 }
  0xde   :  { %v117_v36 = vadd.f32 %v116_v35, %v115_v34 }
  0xe0   :  { %v118_v37 = vrot.slane %v117_v36, 1 }
  0xe2   :  { %v119_v38 = vadd.f32 %v118_v37, %v117_v36 }
  0xe4   :  { %147 = vpush %v119_v38 }
 0x105   :  { %s146_s5 = spop %145 }
 0x115   :  { %s148_s12 = spop %147 }
 0x116   :  { %s121_s13 = smul.f32 %s148_s12, %s83_s3 }
 0x118   :  { %s122_s14 = sadd.f32 %s146_s5, %s121_s13 }
 0x11a   :  { %s123_s0 = smul.f32 %s144_s4, %s122_s14 }
 0x11c   :  { %v124_v39 = vstv %s123_s0 }
 0x11d   :  { %126 = vst.msk [vmem:[#allocation10] sm:$0x1] %vm125_vm1, %v124_v39 }
 0x11e   :  { %224 = shalt.err (!%p221_p9)
}
 0x11f   :  { %s225_s21 = scalar_lea.hbm %s347_s6, 16 }
 0x120   :  { %p226_p10 = scmp.ne.s32.totalorder %s347_s6, %s225_s21  ;;  %p229_p11 = scmp.lt.u32.totalorder %s225_s21, %s347_s6 }
 0x122   :  { %p231_p12 = pnand %p229_p11, %p226_p10 }
 0x124   :  { %234 = shalt.err (!%p231_p12)
}
 0x125   :  { %136 = dma.vmem_to_hbm [thread:$0]  %s134_s16, 16, %s347_s6, [#allocation5]  }
 0x126   :  { %241 = dma.done.wait [#allocation5], 16  }
 0x127   :  { %242 = vsyncadd [#allocation5], 4294967280 }
 0x128   :  { %140 = vsyncpa [#allocation4], 1 }
 0x129   :  { %141 = vsyncpa [#allocation9], 1 }
 0x12a   :  { %142 = vsyncpa [#allocation5], 1 }
 0x12b   :  { %143 = vsyncpa [#allocation6], 1 }

</bundles_post_ra>
